<compile_context>
chip_gen: v6e
topology: v6e:2x2x1
jax: 0.10.0
libtpu: 0.0.40
codegen_flags: <defaults>
</compile_context>

<pallas_src>
import functools
import math

import jax
import jax.numpy as jnp
from jax.experimental import pallas as pl
from jax.experimental.pallas import tpu as pltpu


def _mhsa_kernel(C, num_heads, approx_recip, compute_dtype, *refs):
    """One grid step: block_n whole batch elements, flattened to R = block_n*C rows."""
    multi = num_heads > 1
    if multi:
        (x_ref, wqk_ref, bqk_ref, wv_ref, bv_ref, exp_ref, wo_ref, bo_ref,
         o_ref) = refs
    else:
        x_ref, wqk_ref, bqk_ref, wv_ref, bv_ref, o_ref = refs

    R, D = x_ref.shape
    nb = R // C
    H = num_heads

    x = x_ref[...]                                   # (R, D) f32
    xc = x.astype(compute_dtype)                     # bf16 (fast) or f32 MXU input

    # --- score path (f32): fused q/k row-sum mat-vecs, one (R,D)x(D,2H) matmul.
    # score = (sum_i q_i) * (sum_j k_j); 1/sqrt(d_k) pre-folded into the q half.
    qk = jnp.dot(x, wqk_ref[...], preferred_element_type=jnp.float32) + bqk_ref[...]
    score = qk[:, :H] * qk[:, H:]                    # (R, H)

    # segmented softmax over the seq axis C (per batch element, per head).
    # (R, H) -> (nb, C, H) is a leading-dim split -> layout-preserving.
    s3 = score.reshape(nb, C, H)
    s3 = s3 - jnp.max(s3, axis=1, keepdims=True)
    e = jnp.exp(s3)
    denom = jnp.sum(e, axis=1, keepdims=True)
    p = (e * pl.reciprocal(denom, approx=approx_recip)).reshape(R, H)

    # --- fused value projection for all heads: one (R, D) x (D, D) matmul ---
    v = jnp.dot(xc, wv_ref[...], preferred_element_type=jnp.float32) + bv_ref[...]

    if multi:
        # broadcast each head's prob across its d_k output lanes via a tiny
        # one-hot (H, D) matmul (kept for small d_k, per review).
        pfull = jnp.dot(p, exp_ref[...], preferred_element_type=jnp.float32)  # (R, D)
        z = v * pfull
        z = jnp.dot(z.astype(compute_dtype), wo_ref[...],
                    preferred_element_type=jnp.float32) + bo_ref[...]
    else:
        z = v * p                                    # (R,1) lane-broadcast on the VPU

    o_ref[...] = z.astype(o_ref.dtype)


def multi_head_self_attention(x, params, num_heads, *, block_n=None,
                              use_bf16=True, approx_recip=None,
                              vmem_block_budget=32 * 1024 * 1024):
    """x: (N, C, D) float32.  params: dict of stacked per-head weights."""
    N, C, D = x.shape
    assert D % num_heads == 0, "embed_dim must be divisible by num_heads"
    H = num_heads
    d_k = D // H
    multi = H > 1
    compute_dtype = jnp.bfloat16 if use_bf16 else jnp.float32
    cbytes = 2 if use_bf16 else 4
    if approx_recip is None:
        approx_recip = use_bf16
    inv_sqrt_dk = 1.0 / math.sqrt(d_k)

    # ---- weight preprocessing (tiny, pure JAX, outside the kernel) ----
    # q/k only enter through their feature row-sums (exact for this module's score).
    sq = jnp.transpose(params["wq_t"].sum(axis=-1)) * inv_sqrt_dk        # (D, H)
    sk = jnp.transpose(params["wk_t"].sum(axis=-1))                      # (D, H)
    wqk = jnp.concatenate([sq, sk], axis=1)                              # (D, 2H)
    bq = params["bq"].sum(axis=-1) * inv_sqrt_dk                         # (H,)
    bk = params["bk"].sum(axis=-1)                                       # (H,)
    bqk = jnp.concatenate([bq, bk]).reshape(1, 2 * H)                    # (1, 2H)

    # fuse per-head value projections into one (D, D) weight (head-concat on out dim)
    wv = jnp.transpose(params["wv_t"], (1, 0, 2)).reshape(D, D).astype(compute_dtype)
    bv = params["bv"].reshape(1, D).astype(jnp.float32)

    weight_args = [wqk, bqk, wv, bv]
    weight_shapes = [(D, 2 * H), (1, 2 * H), (D, D), (1, D)]
    if multi:
        # one-hot head-expansion matrix: (p @ expand)[r, d] == p[r, d // d_k]
        expand = (jnp.arange(D)[None, :] // d_k
                  == jnp.arange(H)[:, None]).astype(jnp.float32)         # (H, D)
        wo = params["wo_t"].astype(compute_dtype)
        bo = params["bo"].reshape(1, D).astype(jnp.float32)
        weight_args += [expand, wo, bo]
        weight_shapes += [(H, D), (D, D), (1, D)]

    # resident (single-buffered) weight footprint
    w_bytes = D * 2 * H * 4 + 2 * H * 4 + D * D * cbytes + D * 4
    if multi:
        w_bytes += H * D * 4 + D * D * cbytes + D * 4

    # ---- block selection: big row tiles (~1024 rows/step), but >= 2 grid steps ----
    sub = 8 // math.gcd(C, 8)             # granularity so block_n*C % 8 == 0
    if block_n is None:
        block_n = max(1, 1024 // max(C, 1))           # ~1024 rows/step
        block_n = min(block_n, max(1, -(-N // 2)))    # >= 2 steps when N >= 2 (v7x)
    block_n = max(1, min(int(block_n), N))
    block_n = -(-block_n // sub) * sub                # sublane-aligned row blocks

    # VMEM cap: double-buffered x/out blocks + single-buffered resident weights.
    bytes_per_n = 4 * C * D * 4                       # 2x in + 2x out blocks, f32
    max_bn = max(sub, ((vmem_block_budget - w_bytes) // max(bytes_per_n, 1))
                 // sub * sub)
    block_n = max(sub, min(block_n, max_bn))

    block_R = block_n * C
    n_blocks = -(-N // block_n)
    n_pad = n_blocks * block_n
    step_bytes = 2 * block_R * D * 4 * 2 + w_bytes

    x2 = x.reshape(N * C, D)
    if n_pad != N:
        x2 = jnp.pad(x2, ((0, (n_pad - N) * C), (0, 0)))

    def const_spec(shape):
        """Grid-invariant (weight) input: resident in VMEM, single-buffered."""
        imap = lambda i, _nd=len(shape): (0,) * _nd
        try:
            return pl.BlockSpec(shape, imap, pipeline_mode=pl.Buffered(1))
        except TypeError:                 # jax without pipeline_mode= support
            return pl.BlockSpec(shape, imap)

    in_specs = [pl.BlockSpec((block_R, D), lambda i: (i, 0))]
    in_specs += [const_spec(s) for s in weight_shapes]
    out_specs = pl.BlockSpec((block_R, D), lambda i: (i, 0))

    # ---- scheduling hints: explicit VMEM limit + cost estimate ----
    vmem_limit = int(min(max(2 * step_bytes + (4 << 20), 16 << 20), 48 << 20))
    rows_total = n_pad * C
    flops = 2 * rows_total * D * 2 * H + 2 * rows_total * D * D + 8 * rows_total * D
    if multi:
        flops += 2 * rows_total * H * D + 2 * rows_total * D * D
    cost = pl.CostEstimate(flops=int(flops),
                           transcendentals=int(rows_total * H),
                           bytes_accessed=int(2 * rows_total * D * 4 + w_bytes))

    kernel = functools.partial(_mhsa_kernel, C, H, approx_recip, compute_dtype)
    out = pl.pallas_call(
        kernel,
        out_shape=jax.ShapeDtypeStruct((n_pad * C, D), x.dtype),
        grid=(n_blocks,),
        in_specs=in_specs,
        out_specs=out_specs,
        compiler_params=pltpu.CompilerParams(
            dimension_semantics=("parallel",),
            vmem_limit_bytes=vmem_limit),
        cost_estimate=cost,
    )(x2, *weight_args)
    # TODO(synk): for D < 128 the (rows, D) blocks remain lane-masked; the review's
    # (n_pad, C*D) lane-dense slab needs an in-kernel lane<->sublane relayout that
    # Mosaic's reshape does not guarantee for arbitrary C/D, so it is not used here.
    return out[: N * C].reshape(N, C, D)


def init_params(key, embed_dim, num_heads):
    """Deterministic init mimicking nn.Linear default: U(-1/sqrt(fan_in), +)."""
    d_k = embed_dim // num_heads
    ks = jax.random.split(key, 8)
    lim = 1.0 / math.sqrt(embed_dim)
    u = lambda k, shape: jax.random.uniform(k, shape, jnp.float32, -lim, lim)
    params = {
        "wq_t": u(ks[0], (num_heads, embed_dim, d_k)),
        "bq":   u(ks[1], (num_heads, d_k)),
        "wk_t": u(ks[2], (num_heads, embed_dim, d_k)),
        "bk":   u(ks[3], (num_heads, d_k)),
        "wv_t": u(ks[4], (num_heads, embed_dim, d_k)),
        "bv":   u(ks[5], (num_heads, d_k)),
    }
    if num_heads > 1:
        params["wo_t"] = u(ks[6], (embed_dim, embed_dim))
        params["bo"] = u(ks[7], (embed_dim,))
    return params


def reference(x, params, num_heads):
    """Pure-JAX reference matching the PyTorch forward."""
    N, C, D = x.shape
    d_k = D // num_heads
    heads = []
    for h in range(num_heads):
        q = x @ params["wq_t"][h] + params["bq"][h]
        k = x @ params["wk_t"][h] + params["bk"][h]
        v = x @ params["wv_t"][h] + params["bv"][h]
        score = jnp.einsum('nci,ncj->nc', q, k) / math.sqrt(d_k)
        p = jax.nn.softmax(score, axis=-1)
        heads.append(v * p[..., None])
    z = jnp.concatenate(heads, axis=-1)
    if num_heads > 1:
        z = z @ params["wo_t"] + params["bo"]
    return z


if __name__ == "__main__":
    N, C, D = 4, 8, 32                                  # batch, seq, embed_dim
    key = jax.random.PRNGKey(0)
    kx, kp1, kp2 = jax.random.split(key, 3)
    x = jax.random.normal(kx, (N, C, D), dtype=jnp.float32)

    ok = True
    for num_heads, kp in ((1, kp1), (2, kp2)):
        params = init_params(kp, D, num_heads)
        ref = reference(x, params, num_heads)

        # exact f32 path, 4-step grid (block_n=1), exact reciprocal
        out = jax.block_until_ready(
            multi_head_self_attention(x, params, num_heads,
                                      block_n=1, use_bf16=False,
                                      approx_recip=False))
        ok &= out.shape == (N, C, D)
        ok &= bool(jnp.allclose(out, ref, atol=1e-4, rtol=1e-4))

        # fast path: bf16 MXU inputs for V/Wo, default blocking (2 parallel steps)
        out_fast = jax.block_until_ready(
            multi_head_self_attention(x, params, num_heads))
        ok &= out_fast.shape == (N, C, D)
        ok &= bool(jnp.allclose(out_fast, ref, atol=5e-2, rtol=5e-2))

    if ok:
        print("KERNEL_OK")
</pallas_src>

<mosaic_0001>
module attributes {stable_mosaic.version = 11 : i64} {
  func.func @_mhsa_kernel(%arg0: i32, %arg1: memref<8x32xf32, #tpu.memory_space<vmem>>, %arg2: memref<32x2xf32, #tpu.memory_space<vmem>>, %arg3: memref<1x2xf32, #tpu.memory_space<vmem>>, %arg4: memref<32x32xf32, #tpu.memory_space<vmem>>, %arg5: memref<1x32xf32, #tpu.memory_space<vmem>>, %arg6: memref<8x32xf32, #tpu.memory_space<vmem>>) attributes {dimension_semantics = [#tpu.dimension_semantics<parallel>], iteration_bounds = array<i64: 4>, scalar_prefetch = 0 : i64, scratch_operands = 0 : i64, tpu.core_type = #tpu.core_type<tc>, window_params = [{transform_indices = @transform_0, window_bounds = array<i64: 8, 32>}, {pipeline_mode = #tpu.pipeline_mode<synchronous>, transform_indices = @transform_1, window_bounds = array<i64: 32, 2>}, {pipeline_mode = #tpu.pipeline_mode<synchronous>, transform_indices = @transform_2, window_bounds = array<i64: 1, 2>}, {pipeline_mode = #tpu.pipeline_mode<synchronous>, transform_indices = @transform_3, window_bounds = array<i64: 32, 32>}, {pipeline_mode = #tpu.pipeline_mode<synchronous>, transform_indices = @transform_4, window_bounds = array<i64: 1, 32>}, {transform_indices = @transform_5, window_bounds = array<i64: 8, 32>}]} {
    %c0 = arith.constant 0 : index
    %c0_0 = arith.constant 0 : index
    %0 = vector.load %arg1[%c0, %c0_0] : memref<8x32xf32, #tpu.memory_space<vmem>>, vector<8x32xf32>
    %c0_1 = arith.constant 0 : index
    %c0_2 = arith.constant 0 : index
    %1 = vector.load %arg2[%c0_1, %c0_2] : memref<32x2xf32, #tpu.memory_space<vmem>>, vector<32x2xf32>
    %cst = arith.constant dense<0.000000e+00> : vector<8x2xf32>
    %2 = tpu.matmul %0, %1, %cst {dimension_numbers = #tpu.dot_dimension_numbers<[1], [0], [0], [1], [0, 0, 1, 1], [], []>} : vector<8x32xf32>, vector<32x2xf32>, vector<8x2xf32> -> vector<8x2xf32>
    %c0_3 = arith.constant 0 : index
    %c0_4 = arith.constant 0 : index
    %3 = vector.load %arg3[%c0_3, %c0_4] : memref<1x2xf32, #tpu.memory_space<vmem>>, vector<1x2xf32>
    %4 = vector.broadcast %3 : vector<1x2xf32> to vector<8x2xf32>
    %5 = arith.addf %2, %4 : vector<8x2xf32>
    %6 = vector.extract_strided_slice %5 {offsets = [0, 0], sizes = [8, 1], strides = [1, 1]} : vector<8x2xf32> to vector<8x1xf32>
    %7 = vector.extract_strided_slice %5 {offsets = [0, 1], sizes = [8, 1], strides = [1, 1]} : vector<8x2xf32> to vector<8x1xf32>
    %8 = arith.mulf %6, %7 : vector<8x1xf32>
    %9 = vector.shape_cast %8 : vector<8x1xf32> to vector<1x8x1xf32>
    %cst_5 = arith.constant dense<0xFF800000> : vector<1x1xf32>
    %10 = vector.multi_reduction <maximumf>, %9, %cst_5 [1] : vector<1x8x1xf32> to vector<1x1xf32>
    %11 = vector.shape_cast %10 : vector<1x1xf32> to vector<1x1x1xf32>
    %12 = vector.broadcast %11 : vector<1x1x1xf32> to vector<1x8x1xf32>
    %13 = arith.subf %9, %12 : vector<1x8x1xf32>
    %14 = math.exp %13 : vector<1x8x1xf32>
    %cst_6 = arith.constant dense<0.000000e+00> : vector<1x1xf32>
    %15 = vector.multi_reduction <add>, %14, %cst_6 [1] : vector<1x8x1xf32> to vector<1x1xf32>
    %16 = vector.shape_cast %15 : vector<1x1xf32> to vector<1x1x1xf32>
    %17 = tpu.reciprocal %16 : vector<1x1x1xf32> -> vector<1x1x1xf32>
    %18 = vector.broadcast %17 : vector<1x1x1xf32> to vector<1x8x1xf32>
    %19 = arith.mulf %14, %18 : vector<1x8x1xf32>
    %20 = vector.shape_cast %19 : vector<1x8x1xf32> to vector<8x1xf32>
    %c0_7 = arith.constant 0 : index
    %c0_8 = arith.constant 0 : index
    %21 = vector.load %arg4[%c0_7, %c0_8] : memref<32x32xf32, #tpu.memory_space<vmem>>, vector<32x32xf32>
    %cst_9 = arith.constant dense<0.000000e+00> : vector<8x32xf32>
    %22 = tpu.matmul %0, %21, %cst_9 {dimension_numbers = #tpu.dot_dimension_numbers<[1], [0], [0], [1], [0, 0, 1, 1], [], []>} : vector<8x32xf32>, vector<32x32xf32>, vector<8x32xf32> -> vector<8x32xf32>
    %c0_10 = arith.constant 0 : index
    %c0_11 = arith.constant 0 : index
    %23 = vector.load %arg5[%c0_10, %c0_11] : memref<1x32xf32, #tpu.memory_space<vmem>>, vector<1x32xf32>
    %24 = vector.broadcast %23 : vector<1x32xf32> to vector<8x32xf32>
    %25 = arith.addf %22, %24 : vector<8x32xf32>
    %26 = vector.broadcast %20 : vector<8x1xf32> to vector<8x32xf32>
    %27 = arith.mulf %25, %26 : vector<8x32xf32>
    %c0_12 = arith.constant 0 : index
    %c0_13 = arith.constant 0 : index
    %28 = vector.load %arg6[%c0_12, %c0_13] : memref<8x32xf32, #tpu.memory_space<vmem>>, vector<8x32xf32>
    tpu.vector_store %arg6[%c0_12, %c0_13], %27 {strides = array<i32>} : memref<8x32xf32, #tpu.memory_space<vmem>>, vector<8x32xf32>,
    return
  }
  func.func @transform_0(%arg0: i32) -> (i32, i32) {
    %c0_i32 = arith.constant 0 : i32
    %c0_i32_0 = arith.constant 0 : i32
    return %arg0, %c0_i32 : i32, i32
  }
  func.func @transform_1(%arg0: i32) -> (i32, i32) {
    %c0_i32 = arith.constant 0 : i32
    %c0_i32_0 = arith.constant 0 : i32
    %c0_i32_1 = arith.constant 0 : i32
    return %c0_i32, %c0_i32_0 : i32, i32
  }
  func.func @transform_2(%arg0: i32) -> (i32, i32) {
    %c0_i32 = arith.constant 0 : i32
    %c0_i32_0 = arith.constant 0 : i32
    %c0_i32_1 = arith.constant 0 : i32
    return %c0_i32, %c0_i32_0 : i32, i32
  }
  func.func @transform_3(%arg0: i32) -> (i32, i32) {
    %c0_i32 = arith.constant 0 : i32
    %c0_i32_0 = arith.constant 0 : i32
    %c0_i32_1 = arith.constant 0 : i32
    return %c0_i32, %c0_i32_0 : i32, i32
  }
  func.func @transform_4(%arg0: i32) -> (i32, i32) {
    %c0_i32 = arith.constant 0 : i32
    %c0_i32_0 = arith.constant 0 : i32
    %c0_i32_1 = arith.constant 0 : i32
    return %c0_i32, %c0_i32_0 : i32, i32
  }
  func.func @transform_5(%arg0: i32) -> (i32, i32) {
    %c0_i32 = arith.constant 0 : i32
    %c0_i32_0 = arith.constant 0 : i32
    return %arg0, %c0_i32 : i32, i32
  }
}

</mosaic_0001>

<bundles_post_ra>
// kernel: tpu_custom_call.1
= control target key start
LH: loop header
LB: loop body
LE: loop exit
PB: predicated region body
PF: predicated region fallthrough
CT: control target
= control target key end

     0   :  { %10 = vsyncpa [#allocation3], 0  ;;  %s884_s0 = inlined_call_operand.vmem [shape: f32[32,32], index: 0, kind: input, shape index: {}]   ;;  %s885_s1 = inlined_call_operand.vmem [shape: f32[32,2], index: 1, kind: input, shape index: {}]   ;;  %s886_s2 = inlined_call_operand.vmem [shape: f32[1,2], index: 2, kind: input, shape index: {}]   ;;  %s887_s3 = inlined_call_operand.hbm [shape: f32[32,32], index: 3, kind: input, shape index: {}]   ;;  %s888_s4 = inlined_call_operand.vmem [shape: f32[1,32], index: 4, kind: input, shape index: {}]   ;;  %s889_s5 = inlined_call_operand.hbm [shape: f32[32,32], index: 5, kind: output, shape index: {}]  }
   0x1   :  { %11 = vsyncpa [#allocation4], 0 }
   0x2   :  { %13 = vsyncpa [#allocation4 + $0x1], 0  ;;  %s758_s18 = smov 0   ;;  %s760_s19 = smov 0  }
   0x3   :  { %s762_s20 = smov 0   ;;  %s764_s21 = smov 0  }
   0x4 LB: > { %s779_s22 = sadd.s32 4294967295, %s718_s21   ;;  %s519_s23 = sadd.s32 4294967294, %s718_s21   ;;  %s718_s21 = sphi %s764_s21, %s897_s21   ;;  %s714_s20 = sphi %s762_s20, %s896_s20   ;;  %s710_s19 = sphi %s760_s19, %s895_s19   ;;  %s706_s18 = sphi %s758_s18, %s894_s18  }
   0x5   : > { %s783_s24 = sadd.s32 1, %s718_s21   ;;  %s136_s25 = sadd.s32 1, %s714_s20 }
   0x6   : > { %s133_s26 = ssub.s32 %s718_s21, %s783_s24  ;;  %p146_p0 = scmp.ne.s32.totalorder %s714_s20, %s710_s19 }
   0x7   : > { %p134_p1 = scmp.eq.s32.totalorder %s133_s26, 0  ;;  %p147_p2 = scmp.eq.s32.totalorder %s779_s22, 3 }
   0x8   : > { %p152_p3 = scmp.ne.s32.totalorder %s710_s19, %s706_s18  ;;  %p153_p4 = scmp.eq.s32.totalorder %s519_s23, 3 }
   0x9   : > { %s794_s27 = scalar_select %p134_p1, %s714_s20, %s136_s25  }
   0xa   : > { %p796_p5 = por %p147_p2, %p146_p0  ;;  %p800_p6 = por %p153_p4, %p152_p3 }
   0xb   : > { %p520_p7 = scmp.ge.s32.totalorder %s718_s21, 1  ;;  %p160_p8 = scmp.lt.s32.totalorder %s718_s21, 5 }
   0xc   : > { %s891_s29 = scalar_select %p800_p6, 1, 0 }
   0xd   : > { %p581_p9 = scmp.eq.s32.totalorder %s779_s22, 0  ;;  %p807_p10 = pnand %p520_p7, %p160_p8 }
   0xe   : > { %s720_s6 = smov [#allocation2]  }
   0xf   : > { %s178_s7 = sshll.u32 %s720_s6, 4  ;;  %p573_p11 = pneg %p807_p10  ;;  %s179_s7 = int_to_ptr.vmem [resolvable:$true] %s178_s7 }
  0x10   : > { %s639_s8 = scalar_lea.vmem %s179_s7, 512  ;;  %p647_p3 = scmp.lt.s32.totalorder %s179_s7, %s179_s7 }
  0x11   : > { %p574_p12 = pnand %p581_p9, %p573_p11  ;;  %p640_p0 = scmp.ne.s32.totalorder %s179_s7, %s639_s8 }
  0x12   : > { %p648_p4 = scmp.lt.s32.totalorder %s639_s8, %s639_s8 }
  0x13   : > { %p630_p13 = pneg %p574_p12 }
  0x14   : > { %p649_p6 = por %p648_p4, %p647_p3 }
  0x15   : > { %p642_p1 = pnand %p640_p0, %p630_p13 }
  0x17   : > { %p643_p2 = pneg %p642_p1 }
  0x19   : > { %p650_p7 = pnand %p649_p6, %p643_p2 }
  0x1b   : > { %653 = shalt.err (!%p650_p7)
}
  0x1c   : > { %s721_s9 = smov 128   ;;  %s722_s10 = smov 8  }
  0x1d   : > { %576 = dma.hbm_to_vmem [thread:$0]  (!%p574_p12), %s887_s3, 512, %s179_s7, [#allocation3], %s721_s9, %s721_s9, %s722_s10  }
  0x1e   : > { %204 = sbr.rel (%p807_p10) target bundleno = 557 (0x22d), region = 40 }
  0x23   : > { %697 = dma.done.wait (%p581_p9), [#allocation3], 512  }
  0x24   : > { %699 = vsyncadd (%p581_p9), [#allocation3], 4294966784  ;;  %p231_p8 = scmp.lt.s32.totalorder %s779_s22, 3  ;;  %v723_v0 = vmov 0.0   ;;  %vm724_vm0 = vmmov 0   ;;  %v239_v1 = vld [vmem:[%s885_s1 + $0x18] sm:$0xff] }
  0x25   : > { %545 = vmatprep.subr.mxu0 %v723_v0  ;;  %553 = vmatprep.mubr.msk.f32.mxu0 %vm724_vm0, %v723_v0  ;;  %v238_v2 = vld [vmem:[%s885_s1 + $0x10] sm:$0xff]  ;;  %v237_v3 = vld [vmem:[%s885_s1 + $0x8] sm:$0xff]  ;;  %v236_v4 = vld [vmem:[%s885_s1] sm:$0xff]  ;;  %vm247_vm1 = vcmask 261120   ;;  %s725_s12 = smov 127   ;;  %v726_v14 = vmov 0  }
  0x26   : > { %s232_s13 = scalar_select %p231_p8, %s779_s22, 3  ;;  %556 = vmatprep.subr.mxu1 %v723_v0  ;;  %564 = vmatprep.mubr.msk.f32.mxu1 %vm724_vm0, %v723_v0  ;;  %v349_v6 = vld [vmem:[#allocation2 + $0x18] sm:$0xff]  ;;  %v348_v7 = vld [vmem:[#allocation2 + $0x10] sm:$0xff]  ;;  %v347_v8 = vld [vmem:[#allocation2 + $0x8] sm:$0xff]  ;;  %vm326_vm2 = vcmask 7168  }
  0x27   : > { %546 = vmatpush3.msra.mxu0 %v239_v1  ;;  %557 = vmatpush3.msra.mxu1 %v349_v6  ;;  %v346_v9 = vld [vmem:[#allocation2] sm:$0xff]  ;;  %s532_s17 = sshll.u32 %s779_s22, 7  ;;  %s727_s9 = smov [#allocation5]  }
  0x28   : > { %s526_s14 = sshll.u32 %s232_s13, 3  ;;  %547 = vmatprep.subr.mxu0 %v723_v0  ;;  %558 = vmatprep.subr.mxu1 %v723_v0  ;;  %v527_v10 = vld [vmem:[%s886_s2] ss:$0 sm:$0xff]  ;;  %s228_s13 = sand.u32 1, %s710_s19  }
  0x29   : > { %s234_s7 = scalar_lea.vmem %s884_s0, %s526_s14  ;;  %548 = vmatpush3.msra.mxu0 %v238_v2  ;;  %559 = vmatpush3.msra.mxu1 %v348_v7  ;;  %s525_s14 = sshll.u32 %s228_s13, 3  ;;  %v529_v38 = vld [vmem:[%s888_s4] ss:$0 sm:$0xff] }
  0x2a   : > { %549 = vmatprep.subr.mxu0 %v723_v0  ;;  %v235_v5 = vld [vmem:[%s234_s7] sm:$0xff]  ;;  %560 = vmatprep.subr.mxu1 %v723_v0  ;;  %s230_s23 = scalar_lea.vmem [#allocation5], %s525_s14  ;;  %s446_s6 = scalar_lea.hbm %s889_s5, %s532_s17 }
  0x2b   : > { %550 = vmatpush3.msra.mxu0 %v237_v3  ;;  %561 = vmatpush3.msra.mxu1 %v347_v8  ;;  %s448_s25 = sshll.u32 %s230_s23, 4  ;;  %s435_s7 = scalar_lea.sflag [#allocation4], %s228_s13  ;;  %s449_s25 = int_to_ptr.vmem [resolvable:$true] %s448_s25 }
  0x2c   : > { %551 = vmatprep.subr.mxu0 %v723_v0  ;;  %562 = vmatprep.subr.mxu1 %v723_v0  ;;  %s654_s8 = scalar_lea.vmem %s449_s25, 128  ;;  %s658_s10 = sshll.u32 %s727_s9, 4  ;;  %s659_s10 = int_to_ptr.vmem [resolvable:$false] %s658_s10 }
  0x2d   : > { %552 = vmatpush3.msra.mxu0 %v236_v4  ;;  %563 = vmatpush3.msra.mxu1 %v346_v9  ;;  %p655_p6 = scmp.ne.s32.totalorder %s449_s25, %s654_s8  ;;  %s660_s22 = scalar_lea.vmem %s659_s10, 256 }
  0x2e   : > { %554 = vmatmul.mubr.msk.f32.vlgmr.msra.gmra.mxu0 %vm247_vm1, %v235_v5  ;;  %565 = vmatmul.mubr.msk.f32.vlgmr.msra.gmra.mxu1 %vm247_vm1, %v235_v5  ;;  %p661_p11 = scmp.lt.s32.totalorder %s449_s25, %s659_s10  ;;  %p662_p12 = scmp.lt.s32.totalorder %s660_s22, %s654_s8 }
  0x2f   : > { %623 = vset.pattern.permute.xlu0 %v726_v14  ;;  %p656_p9 = pnand %p655_p6, %p796_p5 }
  0x30   : > { %p663_p13 = por %p662_p12, %p661_p11 }
  0x31   : > { %p657_p10 = pneg %p656_p9 }
  0x33   : > { %p664_p0 = pnand %p663_p13, %p657_p10 }
  0xee   : > { %v317_v11 = vpop.f32.mrf.mxu0  ;;  %v423_v15 = vpop.f32.mrf.mxu1 }
  0xef   : > { %v318_v12 = vadd.f32 %v527_v10, %v317_v11  ;;  %v424_v39 = vadd.f32 %v529_v38, %v423_v15 }
  0xf0   : > { %v555_v13 = vpop.f32.mrf.mxu0  ;;  %v566_v16 = vpop.f32.mrf.mxu1 }
  0xf1   : > { %322 = vrot.lane.b32.xlu0 %v318_v12, %s725_s12 }
 0x163   : > { %v323_v17 = vpop.permute.xlu0 %322 }
 0x164   : > { %v325_v18 = vmul.f32 %v323_v17, %v318_v12 }
 0x166   : > { %v327_v19 = vsel %vm326_vm2, %v325_v18, -inf }
 0x167   : > { %v328_v20 = vrot.slane %v327_v19, 4 }
 0x169   : > { %v329_v21 = vmax.f32 %v327_v19, %v328_v20 }
 0x16b   : > { %v330_v22 = vrot.slane %v329_v21, 2 }
 0x16d   : > { %v331_v23 = vmax.f32 %v329_v21, %v330_v22 }
 0x16f   : > { %v332_v24 = vrot.slane %v331_v23, 1 }
 0x171   : > { %v333_v25 = vmax.f32 %v331_v23, %v332_v24 }
 0x173   : > { %v334_v26 = vsub.f32 %v325_v18, %v333_v25 }
 0x175   : > { %v335_v27 = vmul.f32 1.442695, %v334_v26 }
 0x177   : > { %624 = vpow2.f32 %v335_v27 }
 0x184   : > { %v625_v28 = vpop.eup %624 }
 0x185   : > { %v337_v29 = vsel %vm326_vm2, %v625_v28, 0.0 }
 0x186   : > { %v338_v30 = vrot.slane %v337_v29, 4 }
 0x188   : > { %v339_v31 = vadd.f32 %v338_v30, %v337_v29 }
 0x18a   : > { %v340_v32 = vrot.slane %v339_v31, 2 }
 0x18c   : > { %v341_v33 = vadd.f32 %v340_v32, %v339_v31 }
 0x18e   : > { %v342_v34 = vrot.slane %v341_v33, 1 }
 0x190   : > { %v343_v35 = vadd.f32 %v342_v34, %v341_v33 }
 0x192   : > { %626 = vrcp.f32 %v343_v35 }
 0x19f   : > { %v627_v36 = vpop.eup %626 }
 0x1a0   : > { %v345_v37 = vmul.f32 %v627_v36, %v625_v28 }
 0x1a2   : > { %429 = vperm.xlu0 %623, %v345_v37  }
 0x21d   : > { %v430_v40 = vpop.permute.xlu0 %429 }
 0x21e   : > { %v432_v41 = vmul.f32 %v430_v40, %v424_v39 }
 0x220   : > { %433 = vst.msk [vmem:[%s230_s23] sm:$0xff] %vm247_vm1, %v432_v41 }
 0x221   : > { %667 = shalt.err (!%p664_p0)
}
 0x222   : > { %s668_s11 = scalar_lea.hbm %s446_s6, 128  ;;  %s672_s14 = scalar_lea.hbm %s889_s5, 512 }
 0x223   : > { %p669_p1 = scmp.ne.s32.totalorder %s446_s6, %s668_s11  ;;  %p673_p4 = scmp.lt.s32.totalorder %s446_s6, %s889_s5 }
 0x224   : > { %p674_p7 = scmp.lt.s32.totalorder %s672_s14, %s668_s11 }
 0x225   : > { %p670_p2 = pnand %p669_p1, %p796_p5 }
 0x226   : > { %p675_p8 = por %p674_p7, %p673_p4 }
 0x227   : > { %p671_p3 = pneg %p670_p2 }
 0x229   : > { %p676_p6 = pnand %p675_p8, %p671_p3 }
 0x22b   : > { %679 = shalt.err (!%p676_p6)
}
 0x22c   : > { %571 = dma.vmem_to_hbm [thread:$0]  (%p796_p5), %s449_s25, 128, %s446_s6, %s435_s7  }
 0x22d PF: > { %p583_p9 = scmp.ge.s32.totalorder %s718_s21, 2  ;;  %s460_s17 = sand.u32 1, %s706_s18  }
 0x22e   : > { %p893_p10 = scmp.ne.s32.totalorder %s891_s29, 0  ;;  %s461_s23 = scalar_lea.sflag [#allocation4], %s460_s17 }
 0x230   : > { %p578_p11 = pnand %p583_p9, %p893_p10 }
 0x232   : > { %p579_p12 = pneg %p578_p11 }
 0x234   : > { %701 = dma.done.wait (%p579_p12), %s461_s23, 128  }
 0x235   : > { %703 = vsyncadd (%p579_p12), %s461_s23, 4294967168  ;;  %p16_p13 = scmp.ge.s32.totalorder %s783_s24, 6   ;;  %s894_s18 = smov %s710_s19 }
 0x236   : > { %s895_s19 = smov %s714_s20  ;;  %s896_s20 = smov %s794_s27 }
 0x237   : > { %s897_s21 = smov %s783_s24  ;;  %18 = sbr.rel (!%p16_p13) target bundleno = 4 (0x4), region = 80 }
 0x23c   :  { %466 = vsyncpa [#allocation3], 1 }
 0x23d   :  { %468 = vsyncpa [#allocation3 + $0x1], 1 }
 0x23e   :  { %469 = vsyncpa [#allocation4], 1 }
 0x23f   :  { %471 = vsyncpa [#allocation4 + $0x1], 1 }

</bundles_post_ra>
